<compile_context>
chip_gen: v6e
topology: v6e:2x2x1
jax: 0.10.0
libtpu: 0.0.40
codegen_flags: <defaults>
</compile_context>

<pallas_src>
import functools
import math

import numpy as np
import jax
import jax.numpy as jnp
from jax import lax
from jax.experimental import pallas as pl
from jax.experimental.pallas import tpu as pltpu


def _sigmoid(x):
    # Same expression in kernel and reference so numerics match exactly.
    return 1.0 / (1.0 + jnp.exp(-x))


def convgru_kernel(x_ref, h_ref, ln_w_ref, ln_b_ref, mask_l_ref, mask_r_ref,
                   w_ru_ref, b_ru_ref, w_o_ref, b_o_ref,
                   out_ref, state_ref, *, cin, chid, H, W, eps):
    HW = H * W
    ct = cin + chid

    x = x_ref[0]      # (cin,  HW)  lane-dense
    h = h_ref[0]      # (chid, HW)

    # --- LayerNorm over the full (ct, HW) slab of cat(x, h), per element ---
    stacked = jnp.concatenate([x, h], axis=0)            # (ct, HW)
    inv_n = 1.0 / float(ct * HW)
    mu = jnp.sum(stacked) * inv_n
    var = jnp.sum((stacked - mu) ** 2) * inv_n
    normed = (stacked - mu) * lax.rsqrt(var + eps) * ln_w_ref[...] + ln_b_ref[...]

    mask_l = mask_l_ref[...]      # (1, HW): 0 where column j == 0     (sx = -1)
    mask_r = mask_r_ref[...]      # (1, HW): 0 where column j == W - 1 (sx = +1)

    def im2col(a):
        # a: (ct, HW) -> (9*ct, HW) patch matrix; row order (ky*3+kx)*ct + ci,
        # value = a[ci, (i+ky-1)*W + (j+kx-1)] with zero padding at borders.
        pieces = []
        for ky in range(3):
            for kx in range(3):
                sy, sx = ky - 1, kx - 1
                s = sy * W + sx
                if s == 0:
                    shifted = a
                elif s > 0:
                    shifted = jnp.concatenate(
                        [a[:, s:], jnp.zeros((ct, s), jnp.float32)], axis=1)
                else:
                    shifted = jnp.concatenate(
                        [jnp.zeros((ct, -s), jnp.float32), a[:, :HW + s]], axis=1)
                if sx == -1:
                    shifted = shifted * mask_l
                elif sx == 1:
                    shifted = shifted * mask_r
                pieces.append(shifted)
        return jnp.concatenate(pieces, axis=0)            # (9*ct, HW)

    # --- reset / update gates: one MXU matmul for both, then sigmoid ---
    patches = im2col(normed)                              # (9*ct, HW)
    gates_lin = jnp.dot(w_ru_ref[...], patches,
                        preferred_element_type=jnp.float32) + b_ru_ref[...]
    gates = _sigmoid(gates_lin)                           # (2*chid, HW)
    reset = gates[:chid]
    update = gates[chid:]

    # --- candidate state: conv3x3(cat(x, h * reset)) -> tanh ---
    cand_in = jnp.concatenate([x, h * reset], axis=0)     # (ct, HW), NOT layer-normed
    patches2 = im2col(cand_in)
    cand = jnp.tanh(jnp.dot(w_o_ref[...], patches2,
                            preferred_element_type=jnp.float32) + b_o_ref[...])

    # --- GRU blend + output activation ---
    new_h = h * (1.0 - update) + cand * update
    state_ref[0] = new_h                                  # next prev_state
    out_ref[0] = _sigmoid(jnp.float32(math.e) * new_h)    # module return value


def convgru_forward(x, prev_state, params):
    """x: (N, cin, H, W), prev_state: (N, chid, H, W). Returns (output, new_state)."""
    N, cin, H, W = x.shape
    chid = prev_state.shape[1]
    ct = cin + chid
    HW = H * W

    # Lane-dense reshapes (H*W into the lane dimension).
    x2 = x.reshape(N, cin, HW)
    h2 = prev_state.reshape(N, chid, HW)
    ln_w2 = params["ln_w"].reshape(ct, HW)
    ln_b2 = params["ln_b"].reshape(ct, HW)

    # Flatten conv weights to (cout, 9*ct), k-major/ci-minor to match im2col rows.
    def flatten_w(w):
        cout = w.shape[0]
        return jnp.transpose(w, (0, 2, 3, 1)).reshape(cout, 9 * w.shape[1])

    w_ru = jnp.concatenate([flatten_w(params["wr"]), flatten_w(params["wu"])], axis=0)
    b_ru = jnp.concatenate([params["br"], params["bu"]]).reshape(2 * chid, 1)
    w_o = flatten_w(params["wo"])
    b_o = params["bo"].reshape(chid, 1)

    # Column-boundary masks for the flattened-HW shifts (computed host-side).
    col = np.arange(HW, dtype=np.int32) % W
    mask_l = jnp.asarray((col != 0).astype(np.float32).reshape(1, HW))
    mask_r = jnp.asarray((col != W - 1).astype(np.float32).reshape(1, HW))

    kernel = functools.partial(convgru_kernel, cin=cin, chid=chid, H=H, W=W, eps=1e-5)

    grid_spec = pltpu.PrefetchScalarGridSpec(
        num_scalar_prefetch=0,
        grid=(N,),
        in_specs=[
            pl.BlockSpec((1, cin, HW), lambda n: (n, 0, 0)),    # x (lane-dense)
            pl.BlockSpec((1, chid, HW), lambda n: (n, 0, 0)),   # prev_state
            pl.BlockSpec((ct, HW), lambda n: (0, 0)),           # layernorm weight
            pl.BlockSpec((ct, HW), lambda n: (0, 0)),           # layernorm bias
            pl.BlockSpec((1, HW), lambda n: (0, 0)),            # left-column mask
            pl.BlockSpec((1, HW), lambda n: (0, 0)),            # right-column mask
            pl.BlockSpec((2 * chid, 9 * ct), lambda n: (0, 0)), # reset+update weights
            pl.BlockSpec((2 * chid, 1), lambda n: (0, 0)),      # reset+update biases
            pl.BlockSpec((chid, 9 * ct), lambda n: (0, 0)),     # output-gate weight
            pl.BlockSpec((chid, 1), lambda n: (0, 0)),          # output-gate bias
        ],
        out_specs=[
            pl.BlockSpec((1, chid, HW), lambda n: (n, 0, 0)),   # sigmoid(e * h_new)
            pl.BlockSpec((1, chid, HW), lambda n: (n, 0, 0)),   # h_new (next state)
        ],
    )

    out2, state2 = pl.pallas_call(
        kernel,
        out_shape=(jax.ShapeDtypeStruct((N, chid, HW), jnp.float32),
                   jax.ShapeDtypeStruct((N, chid, HW), jnp.float32)),
        grid_spec=grid_spec,
        compiler_params=pltpu.CompilerParams(dimension_semantics=("parallel",)),
    )(x2, h2, ln_w2, ln_b2, mask_l, mask_r, w_ru, b_ru, w_o, b_o)

    return out2.reshape(N, chid, H, W), state2.reshape(N, chid, H, W)


# ----------------------------- parameter init -----------------------------

def _orthogonal_conv_weight(key, cout, cin, kh, kw):
    """Deterministic analogue of torch.nn.init.orthogonal_ on a Conv2d weight."""
    rows, cols = cout, cin * kh * kw
    a = jax.random.normal(key, (max(rows, cols), min(rows, cols)), jnp.float32)
    q, r = jnp.linalg.qr(a)
    q = q * jnp.sign(jnp.diagonal(r))[None, :]
    if rows < cols:
        q = q.T
    return q[:rows, :cols].reshape(cout, cin, kh, kw).astype(jnp.float32)


def init_convgru_params(key, input_size, hidden_size, height, width):
    ct = input_size + hidden_size
    kr, ku, ko = jax.random.split(key, 3)
    return {
        "ln_w": jnp.ones((ct, height, width), jnp.float32),    # nn.LayerNorm weight
        "ln_b": jnp.zeros((ct, height, width), jnp.float32),   # nn.LayerNorm bias
        "wr": _orthogonal_conv_weight(kr, hidden_size, ct, 3, 3),
        "br": jnp.zeros((hidden_size,), jnp.float32),
        "wu": _orthogonal_conv_weight(ku, hidden_size, ct, 3, 3),
        "bu": jnp.zeros((hidden_size,), jnp.float32),
        "wo": _orthogonal_conv_weight(ko, hidden_size, ct, 3, 3),
        "bo": jnp.zeros((hidden_size,), jnp.float32),
    }


# ------------------------------- reference --------------------------------

def convgru_reference(x, h, params):
    stacked = jnp.concatenate([x, h], axis=1)
    mu = jnp.mean(stacked, axis=(1, 2, 3), keepdims=True)
    var = jnp.mean((stacked - mu) ** 2, axis=(1, 2, 3), keepdims=True)
    normed = (stacked - mu) * lax.rsqrt(var + 1e-5)
    normed = normed * params["ln_w"][None] + params["ln_b"][None]

    def conv(inp, w, b):
        y = lax.conv_general_dilated(inp, w, (1, 1), [(1, 1), (1, 1)],
                                     dimension_numbers=("NCHW", "OIHW", "NCHW"))
        return y + b[None, :, None, None]

    reset = _sigmoid(conv(normed, params["wr"], params["br"]))
    update = _sigmoid(conv(normed, params["wu"], params["bu"]))
    cand = jnp.tanh(conv(jnp.concatenate([x, h * reset], axis=1),
                         params["wo"], params["bo"]))
    new_h = h * (1.0 - update) + cand * update
    return _sigmoid(math.e * new_h), new_h


# ---------------------------------- main -----------------------------------

if __name__ == "__main__":
    # Small shapes consistent with the module; prev_state is zeros_like(input)
    # (first forward call), which requires hidden_size == input_size.
    N, C_IN, C_HID, H, W = 2, 4, 4, 16, 16

    key = jax.random.PRNGKey(0)
    k_param, k_x = jax.random.split(key)
    params = init_convgru_params(k_param, C_IN, C_HID, H, W)

    x = jax.random.normal(k_x, (N, C_IN, H, W), jnp.float32)
    prev_state = jnp.zeros((N, C_HID, H, W), jnp.float32)  # first call -> zeros

    out, new_state = convgru_forward(x, prev_state, params)
    out = jax.block_until_ready(out)
    new_state = jax.block_until_ready(new_state)

    out_ref, state_ref = convgru_reference(x, prev_state, params)
    np.testing.assert_allclose(np.asarray(out), np.asarray(out_ref), rtol=1e-4, atol=1e-4)
    np.testing.assert_allclose(np.asarray(new_state), np.asarray(state_ref), rtol=1e-4, atol=1e-4)

    print("KERNEL_OK")
</pallas_src>

<mosaic_0001>
module attributes {stable_mosaic.version = 11 : i64} {
  func.func @convgru_kernel(%arg0: i32, %arg1: memref<1x4x256xf32, #tpu.memory_space<vmem>>, %arg2: memref<1x4x256xf32, #tpu.memory_space<vmem>>, %arg3: memref<8x256xf32, #tpu.memory_space<vmem>>, %arg4: memref<8x256xf32, #tpu.memory_space<vmem>>, %arg5: memref<1x256xf32, #tpu.memory_space<vmem>>, %arg6: memref<1x256xf32, #tpu.memory_space<vmem>>, %arg7: memref<8x72xf32, #tpu.memory_space<vmem>>, %arg8: memref<8x1xf32, #tpu.memory_space<vmem>>, %arg9: memref<4x72xf32, #tpu.memory_space<vmem>>, %arg10: memref<4x1xf32, #tpu.memory_space<vmem>>, %arg11: memref<1x4x256xf32, #tpu.memory_space<vmem>>, %arg12: memref<1x4x256xf32, #tpu.memory_space<vmem>>) attributes {dimension_semantics = [#tpu.dimension_semantics<parallel>], iteration_bounds = array<i64: 2>, scalar_prefetch = 0 : i64, scratch_operands = 0 : i64, tpu.core_type = #tpu.core_type<tc>, window_params = [{transform_indices = @transform_0, window_bounds = array<i64: 1, 4, 256>}, {transform_indices = @transform_1, window_bounds = array<i64: 1, 4, 256>}, {pipeline_mode = #tpu.pipeline_mode<synchronous>, transform_indices = @transform_2, window_bounds = array<i64: 8, 256>}, {pipeline_mode = #tpu.pipeline_mode<synchronous>, transform_indices = @transform_3, window_bounds = array<i64: 8, 256>}, {pipeline_mode = #tpu.pipeline_mode<synchronous>, transform_indices = @transform_4, window_bounds = array<i64: 1, 256>}, {pipeline_mode = #tpu.pipeline_mode<synchronous>, transform_indices = @transform_5, window_bounds = array<i64: 1, 256>}, {pipeline_mode = #tpu.pipeline_mode<synchronous>, transform_indices = @transform_6, window_bounds = array<i64: 8, 72>}, {pipeline_mode = #tpu.pipeline_mode<synchronous>, transform_indices = @transform_7, window_bounds = array<i64: 8, 1>}, {pipeline_mode = #tpu.pipeline_mode<synchronous>, transform_indices = @transform_8, window_bounds = array<i64: 4, 72>}, {pipeline_mode = #tpu.pipeline_mode<synchronous>, transform_indices = @transform_9, window_bounds = array<i64: 4, 1>}, {transform_indices = @transform_10, window_bounds = array<i64: 1, 4, 256>}, {transform_indices = @transform_11, window_bounds = array<i64: 1, 4, 256>}]} {
    %c0 = arith.constant 0 : index
    %c0_0 = arith.constant 0 : index
    %c0_1 = arith.constant 0 : index
    %0 = vector.load %arg1[%c0, %c0_0, %c0_1] : memref<1x4x256xf32, #tpu.memory_space<vmem>>, vector<1x4x256xf32>
    %1 = vector.shape_cast %0 : vector<1x4x256xf32> to vector<4x256xf32>
    %c0_2 = arith.constant 0 : index
    %c0_3 = arith.constant 0 : index
    %c0_4 = arith.constant 0 : index
    %2 = vector.load %arg2[%c0_2, %c0_3, %c0_4] : memref<1x4x256xf32, #tpu.memory_space<vmem>>, vector<1x4x256xf32>
    %3 = vector.shape_cast %2 : vector<1x4x256xf32> to vector<4x256xf32>
    %4 = tpu.concatenate %1, %3 in 0 : vector<4x256xf32>, vector<4x256xf32> -> vector<8x256xf32>
    %5 = vector.shape_cast %4 : vector<8x256xf32> to vector<1x8x256xf32>
    %cst = arith.constant dense<0.000000e+00> : vector<1xf32>
    %6 = vector.multi_reduction <add>, %5, %cst [1, 2] : vector<1x8x256xf32> to vector<1xf32>
    %7 = vector.shape_cast %6 : vector<1xf32> to vector<1x1x1xf32>
    %8 = vector.extract %7[0, 0, 0] : f32 from vector<1x1x1xf32>
    %cst_5 = arith.constant 4.8828125E-4 : f32
    %9 = arith.mulf %8, %cst_5 : f32
    %10 = vector.broadcast %9 : f32 to vector<8x256xf32>
    %11 = arith.subf %4, %10 : vector<8x256xf32>
    %12 = arith.mulf %11, %11 : vector<8x256xf32>
    %13 = vector.shape_cast %12 : vector<8x256xf32> to vector<1x8x256xf32>
    %cst_6 = arith.constant dense<0.000000e+00> : vector<1xf32>
    %14 = vector.multi_reduction <add>, %13, %cst_6 [1, 2] : vector<1x8x256xf32> to vector<1xf32>
    %15 = vector.shape_cast %14 : vector<1xf32> to vector<1x1x1xf32>
    %16 = vector.extract %15[0, 0, 0] : f32 from vector<1x1x1xf32>
    %cst_7 = arith.constant 4.8828125E-4 : f32
    %17 = arith.mulf %16, %cst_7 : f32
    %18 = vector.broadcast %9 : f32 to vector<8x256xf32>
    %19 = arith.subf %4, %18 : vector<8x256xf32>
    %cst_8 = arith.constant 9.99999974E-6 : f32
    %20 = arith.addf %17, %cst_8 : f32
    %21 = math.rsqrt %20 : f32
    %22 = vector.broadcast %21 : f32 to vector<8x256xf32>
    %23 = arith.mulf %19, %22 : vector<8x256xf32>
    %c0_9 = arith.constant 0 : index
    %c0_10 = arith.constant 0 : index
    %24 = vector.load %arg3[%c0_9, %c0_10] : memref<8x256xf32, #tpu.memory_space<vmem>>, vector<8x256xf32>
    %25 = arith.mulf %23, %24 : vector<8x256xf32>
    %c0_11 = arith.constant 0 : index
    %c0_12 = arith.constant 0 : index
    %26 = vector.load %arg4[%c0_11, %c0_12] : memref<8x256xf32, #tpu.memory_space<vmem>>, vector<8x256xf32>
    %27 = arith.addf %25, %26 : vector<8x256xf32>
    %c0_13 = arith.constant 0 : index
    %c0_14 = arith.constant 0 : index
    %28 = vector.load %arg5[%c0_13, %c0_14] : memref<1x256xf32, #tpu.memory_space<vmem>>, vector<1x256xf32>
    %c0_15 = arith.constant 0 : index
    %c0_16 = arith.constant 0 : index
    %29 = vector.load %arg6[%c0_15, %c0_16] : memref<1x256xf32, #tpu.memory_space<vmem>>, vector<1x256xf32>
    %cst_17 = arith.constant 0.000000e+00 : f32
    %30 = vector.broadcast %cst_17 : f32 to vector<8x17xf32>
    %31 = vector.extract_strided_slice %27 {offsets = [0, 0], sizes = [8, 239], strides = [1, 1]} : vector<8x256xf32> to vector<8x239xf32>
    %32 = tpu.concatenate %30, %31 in 1 : vector<8x17xf32>, vector<8x239xf32> -> vector<8x256xf32>
    %33 = vector.broadcast %28 : vector<1x256xf32> to vector<8x256xf32>
    %34 = arith.mulf %32, %33 : vector<8x256xf32>
    %cst_18 = arith.constant 0.000000e+00 : f32
    %35 = vector.broadcast %cst_18 : f32 to vector<8x16xf32>
    %36 = vector.extract_strided_slice %27 {offsets = [0, 0], sizes = [8, 240], strides = [1, 1]} : vector<8x256xf32> to vector<8x240xf32>
    %37 = tpu.concatenate %35, %36 in 1 : vector<8x16xf32>, vector<8x240xf32> -> vector<8x256xf32>
    %cst_19 = arith.constant 0.000000e+00 : f32
    %38 = vector.broadcast %cst_19 : f32 to vector<8x15xf32>
    %39 = vector.extract_strided_slice %27 {offsets = [0, 0], sizes = [8, 241], strides = [1, 1]} : vector<8x256xf32> to vector<8x241xf32>
    %40 = tpu.concatenate %38, %39 in 1 : vector<8x15xf32>, vector<8x241xf32> -> vector<8x256xf32>
    %41 = vector.broadcast %29 : vector<1x256xf32> to vector<8x256xf32>
    %42 = arith.mulf %40, %41 : vector<8x256xf32>
    %cst_20 = arith.constant 0.000000e+00 : f32
    %43 = vector.broadcast %cst_20 : f32 to vector<8x1xf32>
    %44 = vector.extract_strided_slice %27 {offsets = [0, 0], sizes = [8, 255], strides = [1, 1]} : vector<8x256xf32> to vector<8x255xf32>
    %45 = tpu.concatenate %43, %44 in 1 : vector<8x1xf32>, vector<8x255xf32> -> vector<8x256xf32>
    %46 = vector.broadcast %28 : vector<1x256xf32> to vector<8x256xf32>
    %47 = arith.mulf %45, %46 : vector<8x256xf32>
    %48 = vector.extract_strided_slice %27 {offsets = [0, 1], sizes = [8, 255], strides = [1, 1]} : vector<8x256xf32> to vector<8x255xf32>
    %cst_21 = arith.constant 0.000000e+00 : f32
    %49 = vector.broadcast %cst_21 : f32 to vector<8x1xf32>
    %50 = tpu.concatenate %48, %49 in 1 : vector<8x255xf32>, vector<8x1xf32> -> vector<8x256xf32>
    %51 = vector.broadcast %29 : vector<1x256xf32> to vector<8x256xf32>
    %52 = arith.mulf %50, %51 : vector<8x256xf32>
    %53 = vector.extract_strided_slice %27 {offsets = [0, 15], sizes = [8, 241], strides = [1, 1]} : vector<8x256xf32> to vector<8x241xf32>
    %cst_22 = arith.constant 0.000000e+00 : f32
    %54 = vector.broadcast %cst_22 : f32 to vector<8x15xf32>
    %55 = tpu.concatenate %53, %54 in 1 : vector<8x241xf32>, vector<8x15xf32> -> vector<8x256xf32>
    %56 = vector.broadcast %28 : vector<1x256xf32> to vector<8x256xf32>
    %57 = arith.mulf %55, %56 : vector<8x256xf32>
    %58 = vector.extract_strided_slice %27 {offsets = [0, 16], sizes = [8, 240], strides = [1, 1]} : vector<8x256xf32> to vector<8x240xf32>
    %cst_23 = arith.constant 0.000000e+00 : f32
    %59 = vector.broadcast %cst_23 : f32 to vector<8x16xf32>
    %60 = tpu.concatenate %58, %59 in 1 : vector<8x240xf32>, vector<8x16xf32> -> vector<8x256xf32>
    %61 = vector.extract_strided_slice %27 {offsets = [0, 17], sizes = [8, 239], strides = [1, 1]} : vector<8x256xf32> to vector<8x239xf32>
    %cst_24 = arith.constant 0.000000e+00 : f32
    %62 = vector.broadcast %cst_24 : f32 to vector<8x17xf32>
    %63 = tpu.concatenate %61, %62 in 1 : vector<8x239xf32>, vector<8x17xf32> -> vector<8x256xf32>
    %64 = vector.broadcast %29 : vector<1x256xf32> to vector<8x256xf32>
    %65 = arith.mulf %63, %64 : vector<8x256xf32>
    %66 = tpu.concatenate %34, %37, %42, %47, %27, %52, %57, %60, %65 in 0 : vector<8x256xf32>, vector<8x256xf32>, vector<8x256xf32>, vector<8x256xf32>, vector<8x256xf32>, vector<8x256xf32>, vector<8x256xf32>, vector<8x256xf32>, vector<8x256xf32> -> vector<72x256xf32>
    %c0_25 = arith.constant 0 : index
    %c0_26 = arith.constant 0 : index
    %67 = vector.load %arg7[%c0_25, %c0_26] : memref<8x72xf32, #tpu.memory_space<vmem>>, vector<8x72xf32>
    %cst_27 = arith.constant dense<0.000000e+00> : vector<8x256xf32>
    %68 = tpu.matmul %67, %66, %cst_27 {dimension_numbers = #tpu.dot_dimension_numbers<[1], [0], [0], [1], [0, 0, 1, 1], [], []>} : vector<8x72xf32>, vector<72x256xf32>, vector<8x256xf32> -> vector<8x256xf32>
    %c0_28 = arith.constant 0 : index
    %c0_29 = arith.constant 0 : index
    %69 = vector.load %arg8[%c0_28, %c0_29] : memref<8x1xf32, #tpu.memory_space<vmem>>, vector<8x1xf32>
    %70 = vector.broadcast %69 : vector<8x1xf32> to vector<8x256xf32>
    %71 = arith.addf %68, %70 : vector<8x256xf32>
    %cst_30 = arith.constant 0.000000e+00 : f32
    %72 = vector.broadcast %cst_30 : f32 to vector<8x256xf32>
    %73 = arith.subf %72, %71 : vector<8x256xf32>
    %74 = math.exp %73 : vector<8x256xf32>
    %cst_31 = arith.constant 1.000000e+00 : f32
    %75 = vector.broadcast %cst_31 : f32 to vector<8x256xf32>
    %76 = arith.addf %75, %74 : vector<8x256xf32>
    %cst_32 = arith.constant 1.000000e+00 : f32
    %77 = vector.broadcast %cst_32 : f32 to vector<8x256xf32>
    %78 = arith.divf %77, %76 : vector<8x256xf32>
    %79 = vector.extract_strided_slice %78 {offsets = [0, 0], sizes = [4, 256], strides = [1, 1]} : vector<8x256xf32> to vector<4x256xf32>
    %80 = vector.extract_strided_slice %78 {offsets = [4, 0], sizes = [4, 256], strides = [1, 1]} : vector<8x256xf32> to vector<4x256xf32>
    %81 = arith.mulf %3, %79 : vector<4x256xf32>
    %82 = tpu.concatenate %1, %81 in 0 : vector<4x256xf32>, vector<4x256xf32> -> vector<8x256xf32>
    %cst_33 = arith.constant 0.000000e+00 : f32
    %83 = vector.broadcast %cst_33 : f32 to vector<8x17xf32>
    %84 = vector.extract_strided_slice %82 {offsets = [0, 0], sizes = [8, 239], strides = [1, 1]} : vector<8x256xf32> to vector<8x239xf32>
    %85 = tpu.concatenate %83, %84 in 1 : vector<8x17xf32>, vector<8x239xf32> -> vector<8x256xf32>
    %86 = vector.broadcast %28 : vector<1x256xf32> to vector<8x256xf32>
    %87 = arith.mulf %85, %86 : vector<8x256xf32>
    %cst_34 = arith.constant 0.000000e+00 : f32
    %88 = vector.broadcast %cst_34 : f32 to vector<8x16xf32>
    %89 = vector.extract_strided_slice %82 {offsets = [0, 0], sizes = [8, 240], strides = [1, 1]} : vector<8x256xf32> to vector<8x240xf32>
    %90 = tpu.concatenate %88, %89 in 1 : vector<8x16xf32>, vector<8x240xf32> -> vector<8x256xf32>
    %cst_35 = arith.constant 0.000000e+00 : f32
    %91 = vector.broadcast %cst_35 : f32 to vector<8x15xf32>
    %92 = vector.extract_strided_slice %82 {offsets = [0, 0], sizes = [8, 241], strides = [1, 1]} : vector<8x256xf32> to vector<8x241xf32>
    %93 = tpu.concatenate %91, %92 in 1 : vector<8x15xf32>, vector<8x241xf32> -> vector<8x256xf32>
    %94 = vector.broadcast %29 : vector<1x256xf32> to vector<8x256xf32>
    %95 = arith.mulf %93, %94 : vector<8x256xf32>
    %cst_36 = arith.constant 0.000000e+00 : f32
    %96 = vector.broadcast %cst_36 : f32 to vector<8x1xf32>
    %97 = vector.extract_strided_slice %82 {offsets = [0, 0], sizes = [8, 255], strides = [1, 1]} : vector<8x256xf32> to vector<8x255xf32>
    %98 = tpu.concatenate %96, %97 in 1 : vector<8x1xf32>, vector<8x255xf32> -> vector<8x256xf32>
    %99 = vector.broadcast %28 : vector<1x256xf32> to vector<8x256xf32>
    %100 = arith.mulf %98, %99 : vector<8x256xf32>
    %101 = vector.extract_strided_slice %82 {offsets = [0, 1], sizes = [8, 255], strides = [1, 1]} : vector<8x256xf32> to vector<8x255xf32>
    %cst_37 = arith.constant 0.000000e+00 : f32
    %102 = vector.broadcast %cst_37 : f32 to vector<8x1xf32>
    %103 = tpu.concatenate %101, %102 in 1 : vector<8x255xf32>, vector<8x1xf32> -> vector<8x256xf32>
    %104 = vector.broadcast %29 : vector<1x256xf32> to vector<8x256xf32>
    %105 = arith.mulf %103, %104 : vector<8x256xf32>
    %106 = vector.extract_strided_slice %82 {offsets = [0, 15], sizes = [8, 241], strides = [1, 1]} : vector<8x256xf32> to vector<8x241xf32>
    %cst_38 = arith.constant 0.000000e+00 : f32
    %107 = vector.broadcast %cst_38 : f32 to vector<8x15xf32>
    %108 = tpu.concatenate %106, %107 in 1 : vector<8x241xf32>, vector<8x15xf32> -> vector<8x256xf32>
    %109 = vector.broadcast %28 : vector<1x256xf32> to vector<8x256xf32>
    %110 = arith.mulf %108, %109 : vector<8x256xf32>
    %111 = vector.extract_strided_slice %82 {offsets = [0, 16], sizes = [8, 240], strides = [1, 1]} : vector<8x256xf32> to vector<8x240xf32>
    %cst_39 = arith.constant 0.000000e+00 : f32
    %112 = vector.broadcast %cst_39 : f32 to vector<8x16xf32>
    %113 = tpu.concatenate %111, %112 in 1 : vector<8x240xf32>, vector<8x16xf32> -> vector<8x256xf32>
    %114 = vector.extract_strided_slice %82 {offsets = [0, 17], sizes = [8, 239], strides = [1, 1]} : vector<8x256xf32> to vector<8x239xf32>
    %cst_40 = arith.constant 0.000000e+00 : f32
    %115 = vector.broadcast %cst_40 : f32 to vector<8x17xf32>
    %116 = tpu.concatenate %114, %115 in 1 : vector<8x239xf32>, vector<8x17xf32> -> vector<8x256xf32>
    %117 = vector.broadcast %29 : vector<1x256xf32> to vector<8x256xf32>
    %118 = arith.mulf %116, %117 : vector<8x256xf32>
    %119 = tpu.concatenate %87, %90, %95, %100, %82, %105, %110, %113, %118 in 0 : vector<8x256xf32>, vector<8x256xf32>, vector<8x256xf32>, vector<8x256xf32>, vector<8x256xf32>, vector<8x256xf32>, vector<8x256xf32>, vector<8x256xf32>, vector<8x256xf32> -> vector<72x256xf32>
    %c0_41 = arith.constant 0 : index
    %c0_42 = arith.constant 0 : index
    %120 = vector.load %arg9[%c0_41, %c0_42] : memref<4x72xf32, #tpu.memory_space<vmem>>, vector<4x72xf32>
    %cst_43 = arith.constant dense<0.000000e+00> : vector<4x256xf32>
    %121 = tpu.matmul %120, %119, %cst_43 {dimension_numbers = #tpu.dot_dimension_numbers<[1], [0], [0], [1], [0, 0, 1, 1], [], []>} : vector<4x72xf32>, vector<72x256xf32>, vector<4x256xf32> -> vector<4x256xf32>
    %c0_44 = arith.constant 0 : index
    %c0_45 = arith.constant 0 : index
    %122 = vector.load %arg10[%c0_44, %c0_45] : memref<4x1xf32, #tpu.memory_space<vmem>>, vector<4x1xf32>
    %123 = vector.broadcast %122 : vector<4x1xf32> to vector<4x256xf32>
    %124 = arith.addf %121, %123 : vector<4x256xf32>
    %125 = math.tanh %124 : vector<4x256xf32>
    %cst_46 = arith.constant 1.000000e+00 : f32
    %126 = vector.broadcast %cst_46 : f32 to vector<4x256xf32>
    %127 = arith.subf %126, %80 : vector<4x256xf32>
    %128 = arith.mulf %3, %127 : vector<4x256xf32>
    %129 = arith.mulf %125, %80 : vector<4x256xf32>
    %130 = arith.addf %128, %129 : vector<4x256xf32>
    %c0_47 = arith.constant 0 : index
    %c0_48 = arith.constant 0 : index
    %c0_49 = arith.constant 0 : index
    %131 = vector.load %arg12[%c0_47, %c0_48, %c0_49] : memref<1x4x256xf32, #tpu.memory_space<vmem>>, vector<1x4x256xf32>
    %132 = vector.shape_cast %131 : vector<1x4x256xf32> to vector<4x256xf32>
    %133 = vector.shape_cast %130 : vector<4x256xf32> to vector<1x4x256xf32>
    tpu.vector_store %arg12[%c0_47, %c0_48, %c0_49], %133 {strides = array<i32>} : memref<1x4x256xf32, #tpu.memory_space<vmem>>, vector<1x4x256xf32>,
    %cst_50 = arith.constant 2.71828175 : f32
    %134 = vector.broadcast %cst_50 : f32 to vector<4x256xf32>
    %135 = arith.mulf %134, %130 : vector<4x256xf32>
    %cst_51 = arith.constant 0.000000e+00 : f32
    %136 = vector.broadcast %cst_51 : f32 to vector<4x256xf32>
    %137 = arith.subf %136, %135 : vector<4x256xf32>
    %138 = math.exp %137 : vector<4x256xf32>
    %cst_52 = arith.constant 1.000000e+00 : f32
    %139 = vector.broadcast %cst_52 : f32 to vector<4x256xf32>
    %140 = arith.addf %139, %138 : vector<4x256xf32>
    %cst_53 = arith.constant 1.000000e+00 : f32
    %141 = vector.broadcast %cst_53 : f32 to vector<4x256xf32>
    %142 = arith.divf %141, %140 : vector<4x256xf32>
    %c0_54 = arith.constant 0 : index
    %c0_55 = arith.constant 0 : index
    %c0_56 = arith.constant 0 : index
    %143 = vector.load %arg11[%c0_54, %c0_55, %c0_56] : memref<1x4x256xf32, #tpu.memory_space<vmem>>, vector<1x4x256xf32>
    %144 = vector.shape_cast %143 : vector<1x4x256xf32> to vector<4x256xf32>
    %145 = vector.shape_cast %142 : vector<4x256xf32> to vector<1x4x256xf32>
    tpu.vector_store %arg11[%c0_54, %c0_55, %c0_56], %145 {strides = array<i32>} : memref<1x4x256xf32, #tpu.memory_space<vmem>>, vector<1x4x256xf32>,
    return
  }
  func.func @transform_0(%arg0: i32) -> (i32, i32, i32) {
    %c0_i32 = arith.constant 0 : i32
    %c0_i32_0 = arith.constant 0 : i32
    %c0_i32_1 = arith.constant 0 : i32
    return %arg0, %c0_i32, %c0_i32_0 : i32, i32, i32
  }
  func.func @transform_1(%arg0: i32) -> (i32, i32, i32) {
    %c0_i32 = arith.constant 0 : i32
    %c0_i32_0 = arith.constant 0 : i32
    %c0_i32_1 = arith.constant 0 : i32
    return %arg0, %c0_i32, %c0_i32_0 : i32, i32, i32
  }
  func.func @transform_2(%arg0: i32) -> (i32, i32) {
    %c0_i32 = arith.constant 0 : i32
    %c0_i32_0 = arith.constant 0 : i32
    %c0_i32_1 = arith.constant 0 : i32
    return %c0_i32, %c0_i32_0 : i32, i32
  }
  func.func @transform_3(%arg0: i32) -> (i32, i32) {
    %c0_i32 = arith.constant 0 : i32
    %c0_i32_0 = arith.constant 0 : i32
    %c0_i32_1 = arith.constant 0 : i32
    return %c0_i32, %c0_i32_0 : i32, i32
  }
  func.func @transform_4(%arg0: i32) -> (i32, i32) {
    %c0_i32 = arith.constant 0 : i32
    %c0_i32_0 = arith.constant 0 : i32
    %c0_i32_1 = arith.constant 0 : i32
    return %c0_i32, %c0_i32_0 : i32, i32
  }
  func.func @transform_5(%arg0: i32) -> (i32, i32) {
    %c0_i32 = arith.constant 0 : i32
    %c0_i32_0 = arith.constant 0 : i32
    %c0_i32_1 = arith.constant 0 : i32
    return %c0_i32, %c0_i32_0 : i32, i32
  }
  func.func @transform_6(%arg0: i32) -> (i32, i32) {
    %c0_i32 = arith.constant 0 : i32
    %c0_i32_0 = arith.constant 0 : i32
    %c0_i32_1 = arith.constant 0 : i32
    return %c0_i32, %c0_i32_0 : i32, i32
  }
  func.func @transform_7(%arg0: i32) -> (i32, i32) {
    %c0_i32 = arith.constant 0 : i32
    %c0_i32_0 = arith.constant 0 : i32
    %c0_i32_1 = arith.constant 0 : i32
    return %c0_i32, %c0_i32_0 : i32, i32
  }
  func.func @transform_8(%arg0: i32) -> (i32, i32) {
    %c0_i32 = arith.constant 0 : i32
    %c0_i32_0 = arith.constant 0 : i32
    %c0_i32_1 = arith.constant 0 : i32
    return %c0_i32, %c0_i32_0 : i32, i32
  }
  func.func @transform_9(%arg0: i32) -> (i32, i32) {
    %c0_i32 = arith.constant 0 : i32
    %c0_i32_0 = arith.constant 0 : i32
    %c0_i32_1 = arith.constant 0 : i32
    return %c0_i32, %c0_i32_0 : i32, i32
  }
  func.func @transform_10(%arg0: i32) -> (i32, i32, i32) {
    %c0_i32 = arith.constant 0 : i32
    %c0_i32_0 = arith.constant 0 : i32
    %c0_i32_1 = arith.constant 0 : i32
    return %arg0, %c0_i32, %c0_i32_0 : i32, i32, i32
  }
  func.func @transform_11(%arg0: i32) -> (i32, i32, i32) {
    %c0_i32 = arith.constant 0 : i32
    %c0_i32_0 = arith.constant 0 : i32
    %c0_i32_1 = arith.constant 0 : i32
    return %arg0, %c0_i32, %c0_i32_0 : i32, i32, i32
  }
}

</mosaic_0001>

<bundles_post_ra>
// kernel: tpu_custom_call.1
= control target key start
LH: loop header
LB: loop body
LE: loop exit
PB: predicated region body
PF: predicated region fallthrough
CT: control target
= control target key end

     0   :  { %s2055_s0 = inlined_call_operand.hbm [shape: f32[2,4,256], index: 0, kind: input, shape index: {}]   ;;  %s2056_s1 = inlined_call_operand.hbm [shape: f32[2,4,256], index: 1, kind: input, shape index: {}]   ;;  %s2057_s2 = inlined_call_operand.vmem [shape: f32[8,256], index: 2, kind: input, shape index: {}]   ;;  %s2058_s3 = inlined_call_operand.hbm [shape: f32[8,256], index: 3, kind: input, shape index: {}]   ;;  %s2059_s4 = inlined_call_operand.hbm [shape: f32[1,256], index: 4, kind: input, shape index: {}]   ;;  %s2060_s5 = inlined_call_operand.hbm [shape: f32[1,256], index: 5, kind: input, shape index: {}]   ;;  %s2061_s6 = inlined_call_operand.vmem [shape: f32[8,72], index: 6, kind: input, shape index: {}]   ;;  %s2062_s7 = inlined_call_operand.vmem [shape: f32[8,1], index: 7, kind: input, shape index: {}]   ;;  %s2063_s8 = inlined_call_operand.vmem [shape: f32[4,72], index: 8, kind: input, shape index: {}]   ;;  %s2064_s9 = inlined_call_operand.vmem [shape: f32[4,1], index: 9, kind: input, shape index: {}]   ;;  %s2065_s10 = inlined_call_operand.hbm [shape: f32[2,4,256], index: 10, kind: output, shape index: {0}]   ;;  %s2066_s11 = inlined_call_operand.hbm [shape: f32[2,4,256], index: 11, kind: output, shape index: {1}]  }
   0x1   :  { %2076 = sst [smem:[#allocation25_spill]] %s2058_s3 }
   0x2   :  { %2077 = sst [smem:[#allocation26_spill]] %s2059_s4 }
   0x3   :  { %2078 = sst [smem:[#allocation27_spill]] %s2060_s5 }
   0x4   :  { %17 = vsyncpa [#allocation3], 0 }
   0x5   :  { %19 = vsyncpa [#allocation3 + $0x1], 0 }
   0x6   :  { %20 = vsyncpa [#allocation6], 0 }
   0x7   :  { %22 = vsyncpa [#allocation6 + $0x1], 0 }
   0x8   :  { %23 = vsyncpa [#allocation9], 0 }
   0x9   :  { %24 = vsyncpa [#allocation4], 0 }
   0xa   :  { %26 = vsyncpa [#allocation4 + $0x1], 0 }
   0xb   :  { %27 = vsyncpa [#allocation13], 0 }
   0xc   :  { %29 = vsyncpa [#allocation13 + $0x1], 0  ;;  %s1615_s17 = smov 0   ;;  %s1617_s18 = smov 0  }
   0xd   :  { %s1619_s19 = smov 0   ;;  %s1621_s20 = smov 0  }
   0xe LB: > { %2079 = sst [smem:[#allocation20_spill]] %s1524_s17  ;;  %s1636_s21 = sadd.s32 4294967295, %s1536_s20   ;;  %s1536_s20 = sphi %s1621_s20, %s2107_s20   ;;  %s1532_s19 = sphi %s1619_s19, %s2109_s19   ;;  %s1528_s18 = sphi %s1617_s18, %s2111_s18   ;;  %s1524_s17 = sphi %s1615_s17, %s2110_s17  }
   0xf   : > { %2080 = sst [smem:[#allocation21_spill]] %s1532_s19  ;;  %s1131_s22 = sadd.s32 4294967294, %s1536_s20  }
  0x10   : > { %p55_p0 = scmp.ne.s32.totalorder %s1528_s18, %s1524_s17  ;;  %p2067_p1 = scmp.eq.s32.totalorder %s1636_s21, 0 }
  0x11   : > { %p279_p3 = scmp.eq.s32.totalorder %s1131_s22, 1  ;;  %p1132_p5 = scmp.ge.s32.totalorder %s1536_s20, 1 }
  0x12   : > { %p1645_p4 = por %p2067_p1, %p55_p0  ;;  %p312_p7 = scmp.lt.s32.totalorder %s1536_s20, 3 }
  0x13   : > { %p1650_p6 = por %p279_p3, %p55_p0  ;;  %s1538_s26 = smov [#allocation7]  }
  0x14   : > { %s2081_s23 = scalar_select %p1645_p4, 1, 0 }
  0x15   : > { %s2082_s24 = scalar_select %p1650_p6, 1, 0 }
  0x16   : > { %p1655_p8 = pnand %p1132_p5, %p312_p7  ;;  %s328_s27 = sshll.u32 %s1538_s26, 4  ;;  %s329_s27 = int_to_ptr.vmem [resolvable:$true] %s328_s27 }
  0x17   : > { %2083 = sst [smem:[#allocation22_spill]] %s2082_s24  ;;  %s1539_s28 = smov [#allocation8]  }
  0x18   : > { %s2084_s25 = scalar_select %p1655_p8, 1, 0 }
  0x19   : > { %p1197_p10 = pneg %p1655_p8  ;;  %s339_s29 = sshll.u32 %s1539_s28, 4  ;;  %s340_s29 = int_to_ptr.vmem [resolvable:$true] %s339_s29 }
  0x1a   : > { %s1540_s12 = smov [#allocation10]   ;;  %s1307_s14 = scalar_lea.vmem %s329_s27, 256 }
  0x1b   : > { %p1664_p11 = pnand %p1197_p10, %p2067_p1  ;;  %s350_s13 = sshll.u32 %s1540_s12, 4  ;;  %s1668_s13 = int_to_ptr.vmem [resolvable:$true] %s350_s13 }
  0x1c   : > { %p1308_p13 = scmp.ne.s32.totalorder %s329_s27, %s1307_s14  ;;  %p1315_p5 = scmp.lt.s32.totalorder %s329_s27, %s329_s27 }
  0x1d   : > { %p1298_p12 = pneg %p1664_p11  ;;  %p1316_p7 = scmp.lt.s32.totalorder %s1307_s14, %s1307_s14 }
  0x1f   : > { %p1310_p0 = pnand %p1308_p13, %p1298_p12  ;;  %p1317_p10 = por %p1316_p7, %p1315_p5 }
  0x21   : > { %p1311_p3 = pneg %p1310_p0 }
  0x23   : > { %p1318_p9 = pnand %p1317_p10, %p1311_p3 }
  0x25   : > { %1321 = shalt.err (!%p1318_p9)
}
  0x26   : > { %s2086_s3 = sld [smem:[#allocation25_spill]]  ;;  %s1333_s22 = scalar_lea.vmem %s340_s29, 32 }
  0x27   : > { %p1334_p1 = scmp.ne.s32.totalorder %s340_s29, %s1333_s22  ;;  %p1341_p13 = scmp.lt.s32.totalorder %s340_s29, %s340_s29 }
  0x28   : > { %p1342_p0 = scmp.lt.s32.totalorder %s1333_s22, %s1333_s22 }
  0x29   : > { %p1336_p2 = pnand %p1334_p1, %p1298_p12 }
  0x2a   : > { %p1343_p4 = por %p1342_p0, %p1341_p13 }
  0x2b   : > { %p1337_p6 = pneg %p1336_p2 }
  0x2c   : > { %1200 = dma.hbm_to_vmem [thread:$0]  (!%p1664_p11), %s2086_s3, 256, %s329_s27, [#allocation6]  }
  0x2d   : > { %p1344_p8 = pnand %p1343_p4, %p1337_p6 }
  0x2f   : > { %1347 = shalt.err (!%p1344_p8)
}
  0x30   : > { %s2087_s4 = sld [smem:[#allocation26_spill]]  ;;  %s1359_s27 = scalar_lea.vmem %s1668_s13, 32 }
  0x31   : > { %p1360_p9 = scmp.ne.s32.totalorder %s1668_s13, %s1359_s27  ;;  %p1367_p3 = scmp.lt.s32.totalorder %s1668_s13, %s1668_s13 }
  0x32   : > { %p1368_p4 = scmp.lt.s32.totalorder %s1359_s27, %s1359_s27 }
  0x33   : > { %p1362_p1 = pnand %p1360_p9, %p1298_p12 }
  0x34   : > { %p1369_p6 = por %p1368_p4, %p1367_p3 }
  0x35   : > { %p1363_p2 = pneg %p1362_p1 }
  0x36   : > { %1203 = dma.hbm_to_vmem [thread:$0]  (!%p1664_p11), %s2087_s4, 32, %s340_s29, [#allocation9]  }
  0x37   : > { %p1370_p8 = pnand %p1369_p6, %p1363_p2 }
  0x39   : > { %1373 = shalt.err (!%p1370_p8)
}
  0x3a   : > { %s2088_s5 = sld [smem:[#allocation27_spill]]  ;;  %s1702_s29 = sadd.s32 1, %s1536_s20  }
  0x3b   : > { %2089 = sst [smem:[#allocation23_spill]] %s1702_s29  ;;  %s39_s30 = ssub.s32 %s1536_s20, %s1702_s29 }
  0x3c   : > { %s42_s15 = sadd.s32 1, %s1532_s19  ;;  %p40_p12 = scmp.eq.s32.totalorder %s39_s30, 0 }
  0x3d   : > { %p49_p5 = scmp.ne.s32.totalorder %s1532_s19, %s1528_s18  ;;  %p50_p7 = scmp.eq.s32.totalorder %s1536_s20, 0 }
  0x3e   : > { %p1224_p10 = scmp.lt.s32.totalorder %s1536_s20, 2  ;;  %p2091_p0 = scmp.eq.s32.totalorder %s1636_s21, 1 }
  0x3f   : > { %s1712_s16 = scalar_select %p40_p12, %s1532_s19, %s42_s15  }
  0x40   : > { %1206 = dma.hbm_to_vmem [thread:$0]  (!%p1664_p11), %s2088_s5, 32, %s1668_s13, [#allocation9]  }
  0x41   : > { %2090 = sst [smem:[#allocation24_spill]] %s1712_s16  ;;  %p51_p13 = por %p50_p7, %p49_p5 }
  0x42   : > { %p1716_p9 = por %p2091_p0, %p49_p5  ;;  %s373_s26 = sand.u32 1, %s1532_s19  }
  0x43   : > { %s1167_s28 = sshll.u32 %s1536_s20, 7  ;;  %s1722_s13 = sshll.u32 %s373_s26, 3 }
  0x44   : > { %s2092_s22 = scalar_select %p1716_p9, 1, 0 }
  0x45   : > { %s1727_s14 = scalar_lea.hbm %s2055_s0, %s1167_s28  ;;  %s377_s30 = scalar_lea.vmem [#allocation2], %s1722_s13 }
  0x46   : > { %s385_s15 = sshll.u32 %s377_s30, 4  ;;  %p1730_p11 = pnand %p1224_p10, %p51_p13  ;;  %s386_s15 = int_to_ptr.vmem [resolvable:$true] %s385_s15 }
  0x47   : > { %s1737_s16 = scalar_lea.hbm %s2056_s1, %s1167_s28  ;;  %s374_s27 = scalar_lea.sflag [#allocation3], %s373_s26 }
  0x48   : > { %s1374_s12 = scalar_lea.hbm %s1727_s14, 128  ;;  %p1376_p2 = pneg %p1730_p11 }
  0x49   : > { %p1375_p1 = scmp.ne.s32.totalorder %s1727_s14, %s1374_s12  ;;  %s1379_s29 = scalar_lea.hbm %s2055_s0, 256 }
  0x4a   : > { %p1380_p6 = scmp.lt.s32.totalorder %s1727_s14, %s2055_s0  ;;  %p1381_p8 = scmp.lt.s32.totalorder %s1379_s29, %s1374_s12 }
  0x4b   : > { %p1377_p3 = pnand %p1376_p2, %p1375_p1 }
  0x4c   : > { %p1382_p12 = por %p1381_p8, %p1380_p6 }
  0x4d   : > { %p1378_p4 = pneg %p1377_p3 }
  0x4f   : > { %p1383_p5 = pnand %p1382_p12, %p1378_p4 }
  0x51   : > { %1386 = shalt.err (!%p1383_p5)
}
  0x52   : > { %s1387_s4 = scalar_lea.vmem %s386_s15, 128  ;;  %s1541_s5 = smov [#allocation2]  }
  0x53   : > { %p1388_p7 = scmp.ne.s32.totalorder %s386_s15, %s1387_s4  ;;  %s1392_s26 = sshll.u32 %s1541_s5, 4  ;;  %s1393_s26 = int_to_ptr.vmem [resolvable:$false] %s1392_s26 }
  0x54   : > { %s1394_s19 = scalar_lea.vmem %s1393_s26, 256  ;;  %p1395_p0 = scmp.lt.s32.totalorder %s386_s15, %s1393_s26 }
  0x55   : > { %p1390_p10 = pnand %p1388_p7, %p1376_p2  ;;  %p1396_p1 = scmp.lt.s32.totalorder %s1394_s19, %s1387_s4 }
  0x57   : > { %p1391_p13 = pneg %p1390_p10  ;;  %p1397_p3 = por %p1396_p1, %p1395_p0 }
  0x59   : > { %p1398_p9 = pnand %p1397_p3, %p1391_p13 }
  0x5b   : > { %1401 = shalt.err (!%p1398_p9)
}
  0x5c   : > { %1210 = dma.hbm_to_vmem [thread:$0]  (!%p1730_p11), %s1727_s14, 128, %s386_s15, %s374_s27  }
  0x5d   : > { %s392_s17 = sand.u32 1, %s1536_s20   ;;  %s396_s24 = scalar_lea.vmem [#allocation5], %s1722_s13 }
  0x5e   : > { %s404_s29 = sshll.u32 %s396_s24, 4  ;;  %s393_s28 = scalar_lea.sflag [#allocation6], %s392_s17  ;;  %s405_s29 = int_to_ptr.vmem [resolvable:$true] %s404_s29 }
  0x5f   : > { %s1402_s12 = scalar_lea.hbm %s1737_s16, 128  ;;  %s1407_s5 = scalar_lea.hbm %s2056_s1, 256 }
  0x60   : > { %p1403_p4 = scmp.ne.s32.totalorder %s1737_s16, %s1402_s12  ;;  %p1408_p8 = scmp.lt.s32.totalorder %s1737_s16, %s2056_s1 }
  0x61   : > { %p1409_p12 = scmp.lt.s32.totalorder %s1407_s5, %s1402_s12 }
  0x62   : > { %p1405_p9 = pnand %p1403_p4, %p1376_p2 }
  0x63   : > { %p1410_p5 = por %p1409_p12, %p1408_p8 }
  0x64   : > { %p1406_p6 = pneg %p1405_p9 }
  0x66   : > { %p1411_p7 = pnand %p1410_p5, %p1406_p6 }
  0x68   : > { %1414 = shalt.err (!%p1411_p7)
}
  0x69   : > { %s1415_s13 = scalar_lea.vmem %s405_s29, 128  ;;  %s1542_s14 = smov [#allocation5]  }
  0x6a   : > { %p1416_p10 = scmp.ne.s32.totalorder %s405_s29, %s1415_s13  ;;  %s1420_s15 = sshll.u32 %s1542_s14, 4  ;;  %s1421_s15 = int_to_ptr.vmem [resolvable:$false] %s1420_s15 }
  0x6b   : > { %s1422_s27 = scalar_lea.vmem %s1421_s15, 256  ;;  %p1423_p1 = scmp.lt.s32.totalorder %s405_s29, %s1421_s15 }
  0x6c   : > { %p1418_p13 = pnand %p1416_p10, %p1376_p2  ;;  %p1424_p3 = scmp.lt.s32.totalorder %s1422_s27, %s1415_s13 }
  0x6e   : > { %p1419_p0 = pneg %p1418_p13  ;;  %p1425_p4 = por %p1424_p3, %p1423_p1 }
  0x70   : > { %p1426_p9 = pnand %p1425_p4, %p1419_p0 }
  0x72   : > { %1429 = shalt.err (!%p1426_p9)
}
  0x73   : > { %1213 = dma.hbm_to_vmem [thread:$0]  (!%p1730_p11), %s1737_s16, 128, %s405_s29, %s393_s28  }
  0x74   : > { %p2094_p6 = scmp.ne.s32.totalorder %s2084_s25, 0 }
  0x75   : > { %s1782_s17 = sand.u32 (!%p2094_p6), 1, %s1528_s18   ;;  %p2095_p2 = scmp.ne.s32.totalorder (!%p2094_p6), %s2081_s23, 0 }
  0x76   : > { %413 = sbr.rel (%p2094_p6) target bundleno = 1445 (0x5a5), region = 60  ;;  %s1785_s24 = sshll.u32 (!%p2094_p6), %s1782_s17, 3 }
  0x77   : > { %s416_s12 = scalar_lea.sflag (!%p2094_p6), [#allocation3], %s1782_s17  ;;  %s419_s30 = scalar_lea.vmem (!%p2094_p6), [#allocation2], %s1785_s24 }
  0x7b   : > { %1499 = dma.done.wait (%p2095_p2), %s416_s12, 128  }
  0x7c   : > { %1501 = vsyncadd (%p2095_p2), %s416_s12, 4294967168  ;;  %s424_s3 = sand.u32 1, %s1636_s21   ;;  %s428_s16 = scalar_lea.vmem [#allocation5], %s1785_s24 }
  0x7d   : > { %s425_s25 = scalar_lea.sflag [#allocation6], %s424_s3 }
  0x7e   : > { %1503 = dma.done.wait (%p2095_p2), %s425_s25, 128  }
  0x7f   : > { %1505 = vsyncadd (%p2095_p2), %s425_s25, 4294967168  ;;  %p2096_p11 = scmp.eq.s32.totalorder %s1636_s21, 0 }
  0x81   : > { %1507 = dma.done.wait (%p2096_p11), [#allocation6], 256   ;;  %p2097_p8 = pmov %p2096_p11 }
  0x83   : > { %1509 = vsyncadd (%p2097_p8), [#allocation6], 4294967040  ;;  %p2098_p12 = pmov %p2097_p8 }
  0x84   : > { %p2099_p5 = pmov %p2097_p8 }
  0x85   : > { %1511 = dma.done.wait (%p2098_p12), [#allocation9], 64  }
  0x86   : > { %1513 = vsyncadd (%p2099_p5), [#allocation9], 4294967232  ;;  %v1807_v0 = vld [vmem:[%s419_s30] sm:$0xff]  ;;  %v1809_v1 = vld [vmem:[%s428_s16] sm:$0xff]  ;;  %vm497_vm0 = vcmask 1043456   ;;  %s1543_s27 = smov 113   ;;  %v556_v43 = vlaneseq }
  0x87   : > { %v1813_v2 = vcombine.high %v1807_v0, %v1807_v0  ;;  %v495_v3 = vcombine.low %v1809_v1, %v1809_v1  ;;  %v535_v30 = vld [vmem:[%s2057_s2 + $0x8] sm:$0xff]  ;;  %v534_v33 = vld [vmem:[%s2057_s2] sm:$0xff]  ;;  %s1544_s12 = smov 111   ;;  %s1545_s30 = smov 1   ;;  %v1551_v40 = vmov 0.0   ;;  %v1552_v41 = vmov 0  }
  0x88   : > { %v539_v34 = vld [vmem:[#allocation7 + $0x8] sm:$0xff]  ;;  %v538_v38 = vld [vmem:[#allocation7] sm:$0xff]  ;;  %s1546_s3 = smov 15   ;;  %s1547_s25 = smov 17   ;;  %727 = vmatprep.mubr.f32.mxu0 %v1551_v40  ;;  %908 = vmatprep.mubr.f32.mxu1 %v1551_v40  ;;  %v557_v44 = vshrl.u32 %v556_v43, 7  ;;  %vm645_vm1 = vcmask 908288  }
  0x89   : > { %v498_v4 = vsel %vm497_vm0, %v1807_v0, %v495_v3  ;;  %v499_v5 = vsel %vm497_vm0, %v1813_v2, %v1809_v1  ;;  %s1548_s16 = smov 112   ;;  %1274 = vset.pattern.permute.xlu1 %v1552_v41  ;;  %1275 = vset.pattern.permute.xlu0 %v1552_v41  ;;  %v653_v42 = vld [vmem:[%s2062_s7] sm:$0xff]  ;;  %v543_v46 = vld [vmem:[#allocation10] sm:$0x3]  ;;  %v542_v57 = vld [vmem:[#allocation8] sm:$0x3] }
  0x8a   : > { %v500_v6 = vadd.f32 %v499_v5, %v498_v4  ;;  %v562_v45 = vsub.s32 1, %v557_v44  ;;  %v558_v48 = vsub.s32 0, %v557_v44  ;;  %vm625_vm2 = vcmask 924672   ;;  %p2102_p10 = scmp.ne.s32.totalorder %s2092_s22, 0 }
  0x8b   : > { %vm636_vm3 = vcmask 916480   ;;  %vm614_vm4 = vcmask 1039360   ;;  %vm603_vm5 = vcmask 7168   ;;  %vm581_vm6 = vcmask 121856  }
  0x8c   : > { %501 = vadd.xlane.f32.xlu0 %v500_v6  ;;  %v1867_v47 = vrot.slane %v543_v46, %v562_v45  ;;  %v1871_v52 = vrot.slane %v543_v46, %v558_v48  ;;  %v1875_v60 = vrot.slane %v542_v57, %v562_v45  ;;  %v1878_v62 = vrot.slane %v542_v57, %v558_v48 }
  0x8d   : > { %vm550_vm7 = vcmask 138240   ;;  %vm572_vm8 = vcmask 130048   ;;  %vm659_vm10 = vcmask 588800  }
  0x8e   : > { %vm1902_vm9 = vmneg %vm572_vm8 }
 0x115   : > { %v502_v7 = vpop.xlane.xlu0 %501 }
 0x116   : > { %v503_v8 = vrot.slane %v502_v7, 4 }
 0x118   : > { %v504_v9 = vadd.f32 %v503_v8, %v502_v7 }
 0x11a   : > { %v505_v10 = vrot.slane %v504_v9, 2 }
 0x11c   : > { %v506_v11 = vadd.f32 %v505_v10, %v504_v9 }
 0x11e   : > { %v507_v12 = vrot.slane %v506_v11, 1 }
 0x120   : > { %v508_v13 = vadd.f32 %v507_v12, %v506_v11 }
 0x122   : > { %1171 = vpush %v508_v13 }
 0x153   : > { %s1172_s23 = spop %1171 }
 0x154   : > { %s510_s29 = smul.f32 0.00048828125, %s1172_s23  ;;  %s1549_s23 = smov 16  }
 0x156   : > { %v511_v14 = vstv %s510_s29  ;;  %s1550_s29 = smov 127  }
 0x157   : > { %v512_v15 = vsub.f32 %v498_v4, %v511_v14  ;;  %v513_v16 = vsub.f32 %v499_v5, %v511_v14 }
 0x159   : > { %v514_v17 = vmul.f32 %v512_v15, %v512_v15  ;;  %v515_v18 = vmul.f32 %v513_v16, %v513_v16 }
 0x15b   : > { %v516_v19 = vadd.f32 %v515_v18, %v514_v17 }
 0x15d   : > { %517 = vadd.xlane.f32.xlu0 %v516_v19 }
 0x1e6   : > { %v518_v20 = vpop.xlane.xlu0 %517 }
 0x1e7   : > { %v519_v21 = vrot.slane %v518_v20, 4 }
 0x1e9   : > { %v520_v22 = vadd.f32 %v519_v21, %v518_v20 }
 0x1eb   : > { %v521_v23 = vrot.slane %v520_v22, 2 }
 0x1ed   : > { %v522_v24 = vadd.f32 %v521_v23, %v520_v22 }
 0x1ef   : > { %v523_v25 = vrot.slane %v522_v24, 1 }
 0x1f1   : > { %v524_v26 = vadd.f32 %v523_v25, %v522_v24 }
 0x1f3   : > { %1173 = vpush %v524_v26 }
 0x224   : > { %s1174_s28 = spop %1173 }
 0x225   : > { %s526_s4 = smul.f32 0.00048828125, %s1174_s28  ;;  %s1553_s28 = smov [#allocation12]  }
 0x227   : > { %s527_s5 = sadd.f32 1e-05, %s526_s4  ;;  %s1434_s4 = sshll.u32 %s1553_s28, 4  ;;  %s1435_s4 = int_to_ptr.vmem [resolvable:$false] %s1434_s4 }
 0x229   : > { %v528_v27 = vstv %s527_s5  ;;  %s1436_s5 = scalar_lea.vmem %s1435_s4, 256 }
 0x22a   : > { %1278 = vrsqrt.f32 %v528_v27 }
 0x237   : > { %v1279_v28 = vpop.eup %1278 }
 0x238   : > { %1175 = vpush %v1279_v28 }
 0x269   : > { %s1176_s26 = spop %1175 }
 0x26a   : > { %v531_v29 = vstv %s1176_s26 }
 0x26b   : > { %v532_v31 = vmul.f32 %v531_v29, %v512_v15  ;;  %v533_v32 = vmul.f32 %v531_v29, %v513_v16 }
 0x26d   : > { %v537_v35 = vmul.f32 %v535_v30, %v533_v32  ;;  %v536_v36 = vmul.f32 %v534_v33, %v532_v31 }
 0x26f   : > { %v1828_v37 = vadd.f32 %v539_v34, %v537_v35  ;;  %v1834_v39 = vadd.f32 %v538_v38, %v536_v36  ;;  %v652_v35 = vld [vmem:[%s2061_s6] sm:$0xff] }
 0x271   : > { %623 = vrot.lane.b32.xlu0 %v1828_v37, %s1543_s27  ;;  %643 = vrot.lane.b32.xlu1 %v1828_v37, %s1544_s12 }
 0x275   : > { %601 = vrot.lane.b32.xlu0 %v1828_v37, %s1545_s30  ;;  %641 = vrot.lane.b32.xlu1 %v1834_v39, %s1544_s12 }
 0x279   : > { %579 = vrot.lane.b32.xlu0 %v1828_v37, %s1546_s3  ;;  %621 = vrot.lane.b32.xlu1 %v1834_v39, %s1543_s27 }
 0x27d   : > { %548 = vrot.lane.b32.xlu0 %v1828_v37, %s1547_s25  ;;  %632 = vrot.lane.b32.xlu1 %v1834_v39, %s1548_s16 }
 0x281   : > { %570 = vrot.lane.b32.xlu0 %v1828_v37, %s1549_s23  ;;  %634 = vrot.lane.b32.xlu1 %v1828_v37, %s1548_s16 }
 0x285   : > { %612 = vrot.lane.b32.xlu1 %v1828_v37, %s1550_s29 }
 0x289   : > { %610 = vrot.lane.b32.xlu1 %v1834_v39, %s1550_s29 }
 0x28d   : > { %599 = vrot.lane.b32.xlu1 %v1834_v39, %s1545_s30 }
 0x291   : > { %577 = vrot.lane.b32.xlu1 %v1834_v39, %s1546_s3 }
 0x295   : > { %546 = vrot.lane.b32.xlu1 %v1834_v39, %s1547_s25 }
 0x299   : > { %568 = vrot.lane.b32.xlu1 %v1834_v39, %s1549_s23 }
 0x29d   : > { %656 = vperm.xlu1 %1274, %v653_v42  }
 0x2e3   : > { %v644_v49 = vpop.permute.xlu1 %643  ;;  %v624_v58 = vpop.permute.xlu0 %623 }
 0x2e4   : > { %v649_v50 = vsel %vm645_vm1, %v644_v49, 0.0  ;;  %v629_v61 = vsel %vm625_vm2, %v624_v58, 0.0 }
 0x2e5   : > { %v651_v51 = vmul.f32 %v649_v50, %v1867_v47  ;;  %v631_v4 = vmul.f32 %v629_v61, %v1875_v60 }
 0x2e7   : > { %677 = vmatprep.subr.mxu0 %v651_v51  ;;  %v642_v53 = vpop.permute.xlu1 %641  ;;  %v602_v9 = vpop.permute.xlu0 %601 }
 0x2e8   : > { %v646_v54 = vsel %vm645_vm1, %v642_v53, %v644_v49 }
 0x2e9   : > { %v650_v55 = vmul.f32 %v646_v54, %v1871_v52 }
 0x2eb   : > { %678 = vmatpush1.msra.mxu0 %v650_v55  ;;  %v622_v56 = vpop.permute.xlu1 %621  ;;  %v580_v14 = vpop.permute.xlu0 %579 }
 0x2ec   : > { %v626_v63 = vsel %vm625_vm2, %v622_v56, %v624_v58 }
 0x2ed   : > { %v630_v6 = vmul.f32 %v626_v63, %v1878_v62 }
 0x2ef   : > { %v633_v59 = vpop.permute.xlu1 %632  ;;  %v549_v23 = vpop.permute.xlu0 %548 }
 0x2f3   : > { %v635_v3 = vpop.permute.xlu1 %634  ;;  %v571_v28 = vpop.permute.xlu0 %570 }
 0x2f4   : > { %1151 = vmatprep.subr.msk.mxu0 %vm636_vm3, %v635_v3  ;;  %v637_v5 = vsel %vm636_vm3, %v633_v59, %v635_v3 }
 0x2f5   : > { %680 = vmatpush1.msra.mxu0 %v637_v5 }
 0x2f6   : > { %681 = vmatprep.subr.mxu0 %v631_v4 }
 0x2f7   : > { %682 = vmatpush1.msra.mxu0 %v630_v6  ;;  %v613_v7 = vpop.permute.xlu1 %612 }
 0x2f8   : > { %v618_v8 = vsel %vm614_vm4, %v613_v7, 0.0 }
 0x2f9   : > { %v620_v10 = vmul.f32 %v618_v8, %v1867_v47 }
 0x2fb   : > { %683 = vmatprep.subr.mxu0 %v620_v10  ;;  %v611_v11 = vpop.permute.xlu1 %610 }
 0x2fc   : > { %v615_v12 = vsel %vm614_vm4, %v611_v11, %v613_v7 }
 0x2fd   : > { %v619_v13 = vmul.f32 %v615_v12, %v1871_v52 }
 0x2ff   : > { %684 = vmatpush1.msra.mxu0 %v619_v13  ;;  %v600_v15 = vpop.permute.xlu1 %599 }
 0x300   : > { %v604_v16 = vsel %vm603_vm5, %v600_v15, %v602_v9  ;;  %v607_v17 = vsel %vm603_vm5, 0.0, %v600_v15  ;;  %685 = vmatprep.subr.mxu0 %v1828_v37 }
 0x301   : > { %v608_v18 = vmul.f32 %v607_v17, %v1878_v62  ;;  %v609_v19 = vmul.f32 %v604_v16, %v1875_v60  ;;  %686 = vmatpush1.msra.mxu0 %v1834_v39 }
 0x303   : > { %687 = vmatprep.subr.mxu0 %v609_v19  ;;  %v578_v20 = vpop.permute.xlu1 %577 }
 0x304   : > { %v582_v21 = vsel %vm581_vm6, %v578_v20, %v580_v14  ;;  %v585_v22 = vsel %vm581_vm6, 0.0, %v578_v20  ;;  %688 = vmatpush1.msra.mxu0 %v608_v18 }
 0x305   : > { %v597_v24 = vmul.f32 %v1871_v52, %v585_v22  ;;  %v598_v25 = vmul.f32 %v1867_v47, %v582_v21 }
 0x307   : > { %689 = vmatprep.subr.mxu0 %v598_v25  ;;  %v547_v26 = vpop.permute.xlu1 %546 }
 0x308   : > { %690 = vmatpush1.msra.mxu0 %v597_v24  ;;  %v551_v27 = vsel %vm550_vm7, %v547_v26, %v549_v23  ;;  %v554_v29 = vsel %vm550_vm7, 0.0, %v547_v26 }
 0x309   : > { %v567_v33 = vmul.f32 %v1875_v60, %v551_v27  ;;  %v566_v34 = vmul.f32 %v1878_v62, %v554_v29 }
 0x30b   : > { %v569_v30 = vpop.permute.xlu1 %568 }
 0x30c   : > { %v573_v32 = vsel %vm572_vm8, %v569_v30, %v571_v28 }
 0x30d   : > { %691 = vmatprep.subr.mxu0 %v573_v32 }
 0x30e   : > { %1153 = vmatpush1.msk.msra.mxu0 %vm1902_vm9, %v569_v30 }
 0x30f   : > { %693 = vmatprep.subr.mxu0 %v567_v33 }
 0x310   : > { %694 = vmatpush1.msra.mxu0 %v566_v34 }
 0x311   : > { %1154 = vmatmul.mubr.msk.f32.vlgmr.msra.gmra.mxu0 %vm659_vm10, %v652_v35 }
 0x318   : > { %v657_v36 = vpop.permute.xlu1 %656 }
 0x3d1   : > { %v729_v37 = vpop.f32.mrf.mxu0 }
 0x3d2   : > { %v730_v38 = vadd.f32 %v729_v37, %v657_v36 }
 0x3d3   : > { %v731_v39 = vpop.f32.mrf.mxu0 }
 0x3d4   : > { %v734_v40 = vsub.f32 0.0, %v730_v38  ;;  %v732_v41 = vadd.f32 %v731_v39, %v657_v36 }
 0x3d6   : > { %v736_v42 = vmul.f32 1.442695, %v734_v40  ;;  %v735_v43 = vsub.f32 0.0, %v732_v41 }
 0x3d8   : > { %1280 = vpow2.f32 %v736_v42  ;;  %v738_v44 = vmul.f32 1.442695, %v735_v43 }
 0x3da   : > { %1282 = vpow2.f32 %v738_v44 }
 0x3e5   : > { %v1281_v45 = vpop.eup %1280 }
 0x3e6   : > { %v740_v46 = vadd.f32 1.0, %v1281_v45 }
 0x3e7   : > { %v1283_v48 = vpop.eup %1282 }
 0x3e8   : > { %1284 = vrcp.f32 %v740_v46  ;;  %v741_v49 = vadd.f32 1.0, %v1283_v48 }
 0x3ea   : > { %1286 = vrcp.f32 %v741_v49 }
 0x3f5   : > { %v1915_v50 = vpop.eup %1284 }
 0x3f6   : > { %v917_v54 = vsub.f32 1.0, %v1915_v50  ;;  %v924_v46 = vrot.slane %v1915_v50, 4 }
 0x3f7   : > { %v1917_v51 = vpop.eup %1286 }
 0x3f8   : > { %v748_v53 = vcombine.low %v1915_v50, %v1917_v51  ;;  %v918_v55 = vsub.f32 1.0, %v1917_v51  ;;  %v925_v48 = vrot.slane %v1917_v51, 4 }
 0x3fa   : > { %v750_v56 = vmul.f32 %v748_v53, %v1809_v1  ;;  %v1924_v57 = vcombine.high %v917_v54, %v918_v55 }
 0x3fc   : > { %v755_v58 = vsel %vm497_vm0, %v1813_v2, %v750_v56  ;;  %v752_v59 = vcombine.low %v750_v56, %v750_v56  ;;  %v923_v55 = vmul.f32 %v1924_v57, %v1809_v1 }
 0x3fd   : > { %818 = vrot.lane.b32.xlu1 %v755_v58, %s1548_s16  ;;  %826 = vrot.lane.b32.xlu0 %v755_v58, %s1544_s12 }
 0x3fe   : > { %v754_v61 = vsel %vm497_vm0, %v1807_v0, %v752_v59  ;;  %v835_v0 = vld [vmem:[%s2064_s9] sm:$0xf] }
 0x401   : > { %788 = vrot.lane.b32.xlu1 %v755_v58, %s1545_s30  ;;  %808 = vrot.lane.b32.xlu0 %v755_v58, %s1543_s27 }
 0x405   : > { %798 = vrot.lane.b32.xlu0 %v755_v58, %s1550_s29  ;;  %824 = vrot.lane.b32.xlu1 %v754_v61, %s1544_s12  ;;  %s488_s12 = scalar_lea.vmem [#allocation12], %s1785_s24 }
 0x409   : > { %816 = vrot.lane.b32.xlu0 %v754_v61, %s1548_s16  ;;  %806 = vrot.lane.b32.xlu1 %v754_v61, %s1543_s27  ;;  %s1169_s27 = sshll.u32 %s1636_s21, 7 }
 0x40a   : > { %s1993_s16 = scalar_lea.hbm %s2066_s11, %s1169_s27 }
 0x40d   : > { %786 = vrot.lane.b32.xlu0 %v754_v61, %s1545_s30  ;;  %796 = vrot.lane.b32.xlu1 %v754_v61, %s1550_s29  ;;  %s978_s30 = sshll.u32 %s488_s12, 4  ;;  %s979_s30 = int_to_ptr.vmem [resolvable:$true] %s978_s30 }
 0x40e   : > { %s1430_s29 = scalar_lea.vmem %s979_s30, 128  ;;  %p1437_p1 = scmp.lt.s32.totalorder %s979_s30, %s1435_s4 }
 0x40f   : > { %p1431_p7 = scmp.ne.s32.totalorder %s979_s30, %s1430_s29  ;;  %p1438_p3 = scmp.lt.s32.totalorder %s1436_s5, %s1430_s29 }
 0x411   : > { %776 = vrot.lane.b32.xlu0 %v754_v61, %s1546_s3  ;;  %778 = vrot.lane.b32.xlu1 %v755_v58, %s1546_s3  ;;  %p1432_p13 = pnand %p1431_p7, %p2102_p10  ;;  %p1439_p4 = por %p1438_p3, %p1437_p1 }
 0x413   : > { %p1433_p0 = pneg %p1432_p13 }
 0x415   : > { %758 = vrot.lane.b32.xlu0 %v754_v61, %s1547_s25  ;;  %760 = vrot.lane.b32.xlu1 %v755_v58, %s1547_s25  ;;  %p1440_p9 = pnand %p1439_p4, %p1433_p0 }
 0x419   : > { %768 = vrot.lane.b32.xlu0 %v754_v61, %s1549_s23  ;;  %770 = vrot.lane.b32.xlu1 %v755_v58, %s1549_s23  ;;  %s950_s23 = scalar_lea.sflag [#allocation13], %s1782_s17 }
 0x41d   : > { %838 = vperm.xlu0 %1275, %v835_v0  }
 0x46f   : > { %v819_v2 = vpop.permute.xlu1 %818  ;;  %v827_v63 = vpop.permute.xlu0 %826 }
 0x470   : > { %v831_v3 = vsel %vm645_vm1, %v827_v63, 0.0 }
 0x471   : > { %v833_v4 = vmul.f32 %v831_v3, %v1867_v47 }
 0x473   : > { %v789_v5 = vpop.permute.xlu1 %788  ;;  %858 = vmatprep.subr.mxu1 %v833_v4  ;;  %v809_v6 = vpop.permute.xlu0 %808 }
 0x474   : > { %v813_v10 = vsel %vm625_vm2, %v809_v6, 0.0 }
 0x475   : > { %v815_v15 = vmul.f32 %v813_v10, %v1875_v60 }
 0x477   : > { %v799_v7 = vpop.permute.xlu0 %798  ;;  %v825_v8 = vpop.permute.xlu1 %824 }
 0x478   : > { %v828_v9 = vsel %vm645_vm1, %v825_v8, %v827_v63  ;;  %v803_v12 = vsel %vm614_vm4, %v799_v7, 0.0 }
 0x479   : > { %v832_v11 = vmul.f32 %v828_v9, %v1871_v52  ;;  %v805_v19 = vmul.f32 %v803_v12, %v1867_v47 }
 0x47b   : > { %v817_v13 = vpop.permute.xlu0 %816  ;;  %859 = vmatpush1.msra.mxu1 %v832_v11  ;;  %v807_v14 = vpop.permute.xlu1 %806 }
 0x47c   : > { %v810_v16 = vsel %vm625_vm2, %v807_v14, %v809_v6  ;;  %1155 = vmatprep.subr.msk.mxu1 %vm636_vm3, %v819_v2  ;;  %v820_v17 = vsel %vm636_vm3, %v817_v13, %v819_v2 }
 0x47d   : > { %v814_v18 = vmul.f32 %v810_v16, %v1878_v62  ;;  %861 = vmatpush1.msra.mxu1 %v820_v17 }
 0x47e   : > { %862 = vmatprep.subr.mxu1 %v815_v15 }
 0x47f   : > { %v787_v20 = vpop.permute.xlu0 %786  ;;  %863 = vmatpush1.msra.mxu1 %v814_v18  ;;  %v797_v21 = vpop.permute.xlu1 %796 }
 0x480   : > { %v800_v22 = vsel %vm614_vm4, %v797_v21, %v799_v7  ;;  %864 = vmatprep.subr.mxu1 %v805_v19  ;;  %v790_v23 = vsel %vm603_vm5, %v787_v20, %v789_v5  ;;  %v793_v25 = vsel %vm603_vm5, 0.0, %v787_v20 }
 0x481   : > { %v804_v24 = vmul.f32 %v800_v22, %v1871_v52  ;;  %v795_v28 = vmul.f32 %v790_v23, %v1875_v60  ;;  %v794_v32 = vmul.f32 %v793_v25, %v1878_v62 }
 0x483   : > { %v777_v26 = vpop.permute.xlu0 %776  ;;  %865 = vmatpush1.msra.mxu1 %v804_v24  ;;  %v779_v27 = vpop.permute.xlu1 %778 }
 0x484   : > { %v783_v29 = vsel %vm581_vm6, 0.0, %v777_v26  ;;  %v780_v30 = vsel %vm581_vm6, %v777_v26, %v779_v27  ;;  %866 = vmatprep.subr.mxu1 %v755_v58 }
 0x485   : > { %v785_v33 = vmul.f32 %v780_v30, %v1867_v47  ;;  %867 = vmatpush1.msra.mxu1 %v754_v61  ;;  %v784_v34 = vmul.f32 %v783_v29, %v1871_v52  ;;  %v834_v52 = vld [vmem:[%s2063_s8] sm:$0xf] }
 0x486   : > { %868 = vmatprep.subr.mxu1 %v795_v28 }
 0x487   : > { %v759_v35 = vpop.permute.xlu0 %758  ;;  %869 = vmatpush1.msra.mxu1 %v794_v32  ;;  %v761_v36 = vpop.permute.xlu1 %760 }
 0x488   : > { %870 = vmatprep.subr.mxu1 %v785_v33  ;;  %v762_v37 = vsel %vm550_vm7, %v759_v35, %v761_v36  ;;  %v765_v38 = vsel %vm550_vm7, 0.0, %v759_v35 }
 0x489   : > { %871 = vmatpush1.msra.mxu1 %v784_v34  ;;  %v767_v42 = vmul.f32 %v762_v37, %v1875_v60  ;;  %v766_v47 = vmul.f32 %v765_v38, %v1878_v62 }
 0x48b   : > { %v769_v39 = vpop.permute.xlu0 %768  ;;  %v771_v40 = vpop.permute.xlu1 %770 }
 0x48c   : > { %v772_v41 = vsel %vm572_vm8, %v769_v39, %v771_v40 }
 0x48d   : > { %872 = vmatprep.subr.mxu1 %v772_v41 }
 0x48e   : > { %1157 = vmatpush1.msk.msra.mxu1 %vm1902_vm9, %v769_v39 }
 0x48f   : > { %874 = vmatprep.subr.mxu1 %v767_v42 }
 0x490   : > { %875 = vmatpush1.msra.mxu1 %v766_v47 }
 0x491   : > { %1158 = vmatmul.mubr.msk.f32.vlgmr.msra.gmra.mxu1 %vm659_vm10, %v834_v52 }
 0x498   : > { %v839_v43 = vpop.permute.xlu0 %838 }
 0x551   : > { %v910_v44 = vpop.f32.mrf.mxu1 }
 0x552   : > { %v911_v45 = vadd.f32 %v910_v44, %v839_v43 }
 0x553   : > { %v912_v60 = vpop.f32.mrf.mxu1 }
 0x554   : > { %1288 = vtanh.f32 %v911_v45  ;;  %v913_v62 = vadd.f32 %v912_v60, %v839_v43 }
 0x556   : > { %1290 = vtanh.f32 %v913_v62 }
 0x561   : > { %v1289_v31 = vpop.eup %1288 }
 0x562   : > { %v928_v53 = vmul.f32 %v1289_v31, %v924_v46 }
 0x563   : > { %v1291_v49 = vpop.eup %1290 }
 0x564   : > { %v929_v54 = vmul.f32 %v1291_v49, %v925_v48 }
 0x566   : > { %v932_v56 = vcombine.low %v928_v53, %v929_v54 }
 0x568   : > { %v934_v58 = vadd.f32 %v932_v56, %v923_v55 }
 0x56a   : > { %v936_v50 = vmul.f32 2.7182817, %v934_v58  ;;  %935 = vst [vmem:[%s488_s12] sm:$0xff] %v934_v58 }
 0x56b   : > { %1443 = shalt.err (!%p1440_p9)
}
 0x56c   : > { %s1444_s26 = scalar_lea.hbm %s1993_s16, 128  ;;  %s1448_s14 = scalar_lea.hbm %s2066_s11, 256 }
 0x56d   : > { %p1445_p6 = scmp.ne.s32.totalorder %s1993_s16, %s1444_s26  ;;  %p1449_p8 = scmp.lt.s32.totalorder %s1993_s16, %s2066_s11 }
 0x56e   : > { %p1450_p12 = scmp.lt.s32.totalorder %s1448_s14, %s1444_s26 }
 0x56f   : > { %p1446_p2 = pnand %p1445_p6, %p2102_p10 }
 0x570   : > { %p1451_p5 = por %p1450_p12, %p1449_p8 }
 0x571   : > { %p1447_p11 = pneg %p1446_p2 }
 0x573   : > { %p1452_p7 = pnand %p1451_p5, %p1447_p11 }
 0x575   : > { %1455 = shalt.err (!%p1452_p7)
}
 0x576   : > { %1194 = dma.vmem_to_hbm [thread:$0]  (%p2102_p10), %s979_s30, 128, %s1993_s16, %s950_s23   ;;  %v937_v1 = vsub.f32 0.0, %v936_v50 }
 0x577   : > { %s481_s3 = scalar_lea.vmem [#allocation11], %s1785_s24  ;;  %s2018_s4 = scalar_lea.hbm %s2065_s10, %s1169_s27 }
 0x578   : > { %v938_v51 = vmul.f32 1.442695, %v937_v1  ;;  %s964_s25 = sshll.u32 %s481_s3, 4  ;;  %s945_s5 = scalar_lea.sflag [#allocation4], %s1782_s17  ;;  %s965_s25 = int_to_ptr.vmem [resolvable:$true] %s964_s25 }
 0x579   : > { %s1456_s30 = scalar_lea.vmem %s965_s25, 128  ;;  %s1554_s16 = smov [#allocation11]  }
 0x57a   : > { %1292 = vpow2.f32 %v938_v51  ;;  %p1457_p13 = scmp.ne.s32.totalorder %s965_s25, %s1456_s30  ;;  %s1460_s23 = sshll.u32 %s1554_s16, 4  ;;  %s1461_s23 = int_to_ptr.vmem [resolvable:$false] %s1460_s23 }
 0x57b   : > { %s1462_s24 = scalar_lea.vmem %s1461_s23, 256  ;;  %p1463_p3 = scmp.lt.s32.totalorder %s965_s25, %s1461_s23 }
 0x57c   : > { %p1458_p0 = pnand %p1457_p13, %p2102_p10  ;;  %p1464_p4 = scmp.lt.s32.totalorder %s1462_s24, %s1456_s30 }
 0x57e   : > { %p1459_p1 = pneg %p1458_p0  ;;  %p1465_p9 = por %p1464_p4, %p1463_p3 }
 0x580   : > { %p1466_p6 = pnand %p1465_p9, %p1459_p1 }
 0x587   : > { %v1293_v57 = vpop.eup %1292 }
 0x588   : > { %v940_v59 = vadd.f32 1.0, %v1293_v57 }
 0x58a   : > { %1294 = vrcp.f32 %v940_v59 }
 0x597   : > { %v1295_v61 = vpop.eup %1294 }
 0x598   : > { %943 = vst [vmem:[%s481_s3] sm:$0xff] %v1295_v61 }
 0x599   : > { %1469 = shalt.err (!%p1466_p6)
}
 0x59a   : > { %s1470_s21 = scalar_lea.hbm %s2018_s4, 128  ;;  %s1474_s26 = scalar_lea.hbm %s2065_s10, 256 }
 0x59b   : > { %p1471_p2 = scmp.ne.s32.totalorder %s2018_s4, %s1470_s21  ;;  %p1475_p12 = scmp.lt.s32.totalorder %s2018_s4, %s2065_s10 }
 0x59c   : > { %p1476_p5 = scmp.lt.s32.totalorder %s1474_s26, %s1470_s21 }
 0x59d   : > { %p1472_p11 = pnand %p1471_p2, %p2102_p10 }
 0x59e   : > { %p1477_p7 = por %p1476_p5, %p1475_p12 }
 0x59f   : > { %p1473_p8 = pneg %p1472_p11 }
 0x5a1   : > { %p1478_p13 = pnand %p1477_p7, %p1473_p8 }
 0x5a3   : > { %1481 = shalt.err (!%p1478_p13)
}
 0x5a4   : > { %1193 = dma.vmem_to_hbm [thread:$0]  (%p2102_p10), %s965_s25, 128, %s2018_s4, %s945_s5  }
 0x5a5 PF: > { %s2103_s14 = sld [smem:[#allocation20_spill]]  ;;  %p2106_p1 = scmp.ge.s32.totalorder %s1536_s20, 2 }
 0x5a6   : > { %s2104_s15 = sld [smem:[#allocation22_spill]] }
 0x5ab   : > { %s990_s12 = sand.u32 1, %s2103_s14  }
 0x5ac   : > { %p2105_p0 = scmp.ne.s32.totalorder %s2104_s15, 0  ;;  %s991_s3 = scalar_lea.sflag [#allocation4], %s990_s12 }
 0x5ae   : > { %p1215_p3 = pnand %p2106_p1, %p2105_p0 }
 0x5b0   : > { %p1216_p4 = pneg %p1215_p3 }
 0x5b2   : > { %1515 = dma.done.wait (%p1216_p4), %s991_s3, 128  }
 0x5b3   : > { %1517 = vsyncadd (%p1216_p4), %s991_s3, 4294967168  ;;  %s1000_s29 = scalar_lea.sflag [#allocation13], %s990_s12 }
 0x5b4   : > { %1519 = dma.done.wait (%p1216_p4), %s1000_s29, 128  }
 0x5b5   : > { %1521 = vsyncadd (%p1216_p4), %s1000_s29, 4294967168  ;;  %s2107_s20 = sld [smem:[#allocation23_spill]]  ;;  %s2110_s17 = smov %s1528_s18 }
 0x5b6   : > { %s2108_s22 = sld [smem:[#allocation21_spill]] }
 0x5b7   : > { %s2109_s19 = sld [smem:[#allocation24_spill]] }
 0x5bb   : > { %p32_p10 = scmp.ge.s32.totalorder %s2107_s20, 4  }
 0x5bc   : > { %s2111_s18 = smov %s2108_s22 }
 0x5bd   :  { %34 = sbr.rel (!%p32_p10) target bundleno = 14 (0xe), region = 147 }
 0x5c2   :  { %1005 = vsyncpa [#allocation3], 1 }
 0x5c3   :  { %1007 = vsyncpa [#allocation3 + $0x1], 1 }
 0x5c4   :  { %1008 = vsyncpa [#allocation6], 1 }
 0x5c5   :  { %1010 = vsyncpa [#allocation6 + $0x1], 1 }
 0x5c6   :  { %1011 = vsyncpa [#allocation9], 1 }
 0x5c7   :  { %1012 = vsyncpa [#allocation4], 1 }
 0x5c8   :  { %1014 = vsyncpa [#allocation4 + $0x1], 1 }
 0x5c9   :  { %1015 = vsyncpa [#allocation13], 1 }
 0x5ca   :  { %1017 = vsyncpa [#allocation13 + $0x1], 1 }

</bundles_post_ra>
